<compile_context>
chip_gen: v6e
topology: v6e:2x2x1
jax: 0.10.0
libtpu: 0.0.40
codegen_flags: <defaults>
</compile_context>

<pallas_src>
import functools
import math

import jax
import jax.numpy as jnp
from jax import lax
from jax.experimental import pallas as pl
from jax.experimental.pallas import tpu as pltpu


def _maxpool1d_rows_kernel(x_ref, o_ref, *, kernel_size, stride, h_out):
    """x_ref: (TILE_ROWS, H) lane-dense block; o_ref: (TILE_ROWS, h_out) block."""
    x = x_ref[...].astype(jnp.float32)           # (T, H); f32 keeps the MXU gather exact
    h_in = x.shape[-1]

    # 0/1 selection matrices built from 2-D iotas (TPU requires >=2-D iota).
    row = lax.broadcasted_iota(jnp.int32, (h_in, h_out), 0)   # input column index
    col = lax.broadcasted_iota(jnp.int32, (h_in, h_out), 1)   # output window index

    acc = None
    for k in range(kernel_size):                 # kernel_size is small and static
        sel = (row == col * stride + k).astype(jnp.float32)   # one 1 per output column
        # Exact strided gather: picked[t, h] == x[t, h*stride + k]
        picked = jnp.dot(x, sel,
                         preferred_element_type=jnp.float32,
                         precision=lax.Precision.HIGHEST)      # (T, h_out)
        acc = picked if acc is None else jnp.maximum(acc, picked)

    o_ref[...] = acc.astype(o_ref.dtype)         # single full-tile store


def my_max_pool_1d(x, kernel_size, stride=None):
    """Equivalent of MyMaxPool1D(kernel_size).forward(x) for x in (B, C, H) layout."""
    k = int(kernel_size)
    s = int(stride) if stride is not None else k   # nn.MaxPool2d default: stride = kernel
    lead, h_in = x.shape[:-1], x.shape[-1]
    h_out = (h_in - k) // s + 1 if h_in >= k else 0
    out_shape = lead + (h_out,)

    rows = math.prod(lead) if lead else 1
    if h_out <= 0 or rows == 0:
        return jnp.zeros(out_shape, x.dtype)

    x2 = x.reshape(rows, h_in)                     # free: contiguous reshape

    # Row tiling: ~2 MiB of f32 working set per input tile, sublane-aligned
    # (multiple of 8) and capped so double-buffered in/out tiles stay far below
    # the smallest (v7x, 64 MiB) VMEM budget while leaving plenty of grid steps
    # for both v7x TensorCores on realistic sizes.
    tile_rows = max(1, (2 * 1024 * 1024) // (h_in * 4))
    tile_rows = min(tile_rows, 1024, rows)
    if rows > 8:
        tile_rows = max(8, (tile_rows // 8) * 8)
    grid = (pl.cdiv(rows, tile_rows),)

    kernel = functools.partial(
        _maxpool1d_rows_kernel, kernel_size=k, stride=s, h_out=h_out)

    out2 = pl.pallas_call(
        kernel,
        out_shape=jax.ShapeDtypeStruct((rows, h_out), x.dtype),
        grid=grid,
        in_specs=[pl.BlockSpec((tile_rows, h_in), lambda i: (i, 0))],
        out_specs=pl.BlockSpec((tile_rows, h_out), lambda i: (i, 0)),
        compiler_params=pltpu.CompilerParams(
            dimension_semantics=("parallel",),
            vmem_limit_bytes=32 * 1024 * 1024,   # > v5e's 16 MiB default, safe on v7x
        ),
    )(x2)
    return out2.reshape(out_shape)


def _reference_maxpool1d(x, kernel_size, stride=None):
    k = int(kernel_size)
    s = int(stride) if stride is not None else k
    h_in = x.shape[-1]
    h_out = (h_in - k) // s + 1 if h_in >= k else 0
    if h_out <= 0:
        return jnp.zeros(x.shape[:-1] + (0,), x.dtype)
    windows = jnp.stack([x[..., i * s:i * s + k] for i in range(h_out)], axis=-2)
    return windows.max(axis=-1)


if __name__ == "__main__":
    key0, key1 = jax.random.split(jax.random.PRNGKey(0))

    # BCH usage of the module: (batch, channels, spatial), kernel_size=4.
    B, C, H = 2, 4, 16
    kernel_size = 4
    x = jax.random.normal(key0, (B, C, H), dtype=jnp.float32)

    out = jax.block_until_ready(my_max_pool_1d(x, kernel_size))
    ref = _reference_maxpool1d(x, kernel_size)
    assert out.shape == (B, C, H // kernel_size), out.shape
    assert jnp.allclose(out, ref, atol=1e-6, rtol=1e-6), "mismatch vs reference"

    # Non-divisible length + explicit (overlapping) stride sanity check.
    x2 = jax.random.normal(key1, (2, 3, 19), dtype=jnp.float32)
    out2 = jax.block_until_ready(my_max_pool_1d(x2, 3, stride=2))
    ref2 = _reference_maxpool1d(x2, 3, stride=2)
    assert out2.shape == ref2.shape, (out2.shape, ref2.shape)
    assert jnp.allclose(out2, ref2, atol=1e-6, rtol=1e-6), "mismatch vs reference (stride=2)"

    print("KERNEL_OK")
</pallas_src>

<mosaic_0001>
module attributes {stable_mosaic.version = 11 : i64} {
  func.func @_maxpool1d_rows_kernel(%arg0: i32, %arg1: memref<8x16xf32, #tpu.memory_space<vmem>>, %arg2: memref<8x4xf32, #tpu.memory_space<vmem>>) attributes {dimension_semantics = [#tpu.dimension_semantics<parallel>], iteration_bounds = array<i64: 1>, scalar_prefetch = 0 : i64, scratch_operands = 0 : i64, tpu.core_type = #tpu.core_type<tc>, window_params = [{transform_indices = @transform_0, window_bounds = array<i64: 8, 16>}, {transform_indices = @transform_1, window_bounds = array<i64: 8, 4>}]} {
    %c0 = arith.constant 0 : index
    %c0_0 = arith.constant 0 : index
    %0 = vector.load %arg1[%c0, %c0_0] : memref<8x16xf32, #tpu.memory_space<vmem>>, vector<8x16xf32>
    %1 = tpu.iota {dimensions = array<i32: 0>} : vector<16x4xi32>
    %2 = tpu.iota {dimensions = array<i32: 1>} : vector<16x4xi32>
    %c4_i32 = arith.constant 4 : i32
    %3 = vector.broadcast %c4_i32 : i32 to vector<16x4xi32>
    %4 = arith.muli %2, %3 : vector<16x4xi32>
    %c0_i32 = arith.constant 0 : i32
    %5 = vector.broadcast %c0_i32 : i32 to vector<16x4xi32>
    %6 = arith.addi %4, %5 : vector<16x4xi32>
    %7 = arith.cmpi eq, %1, %6 : vector<16x4xi32>
    %8 = arith.extui %7 : vector<16x4xi1> to vector<16x4xi32>
    %9 = arith.sitofp %8 : vector<16x4xi32> to vector<16x4xf32>
    %cst = arith.constant dense<0.000000e+00> : vector<8x4xf32>
    %10 = tpu.matmul %0, %9, %cst {dimension_numbers = #tpu.dot_dimension_numbers<[1], [0], [0], [1], [0, 0, 1, 1], [], []>, precision = #tpu.contract_precision<fp32>} : vector<8x16xf32>, vector<16x4xf32>, vector<8x4xf32> -> vector<8x4xf32>
    %c4_i32_1 = arith.constant 4 : i32
    %11 = vector.broadcast %c4_i32_1 : i32 to vector<16x4xi32>
    %12 = arith.muli %2, %11 : vector<16x4xi32>
    %c1_i32 = arith.constant 1 : i32
    %13 = vector.broadcast %c1_i32 : i32 to vector<16x4xi32>
    %14 = arith.addi %12, %13 : vector<16x4xi32>
    %15 = arith.cmpi eq, %1, %14 : vector<16x4xi32>
    %16 = arith.extui %15 : vector<16x4xi1> to vector<16x4xi32>
    %17 = arith.sitofp %16 : vector<16x4xi32> to vector<16x4xf32>
    %cst_2 = arith.constant dense<0.000000e+00> : vector<8x4xf32>
    %18 = tpu.matmul %0, %17, %cst_2 {dimension_numbers = #tpu.dot_dimension_numbers<[1], [0], [0], [1], [0, 0, 1, 1], [], []>, precision = #tpu.contract_precision<fp32>} : vector<8x16xf32>, vector<16x4xf32>, vector<8x4xf32> -> vector<8x4xf32>
    %19 = arith.maximumf %10, %18 : vector<8x4xf32>
    %c4_i32_3 = arith.constant 4 : i32
    %20 = vector.broadcast %c4_i32_3 : i32 to vector<16x4xi32>
    %21 = arith.muli %2, %20 : vector<16x4xi32>
    %c2_i32 = arith.constant 2 : i32
    %22 = vector.broadcast %c2_i32 : i32 to vector<16x4xi32>
    %23 = arith.addi %21, %22 : vector<16x4xi32>
    %24 = arith.cmpi eq, %1, %23 : vector<16x4xi32>
    %25 = arith.extui %24 : vector<16x4xi1> to vector<16x4xi32>
    %26 = arith.sitofp %25 : vector<16x4xi32> to vector<16x4xf32>
    %cst_4 = arith.constant dense<0.000000e+00> : vector<8x4xf32>
    %27 = tpu.matmul %0, %26, %cst_4 {dimension_numbers = #tpu.dot_dimension_numbers<[1], [0], [0], [1], [0, 0, 1, 1], [], []>, precision = #tpu.contract_precision<fp32>} : vector<8x16xf32>, vector<16x4xf32>, vector<8x4xf32> -> vector<8x4xf32>
    %28 = arith.maximumf %19, %27 : vector<8x4xf32>
    %c4_i32_5 = arith.constant 4 : i32
    %29 = vector.broadcast %c4_i32_5 : i32 to vector<16x4xi32>
    %30 = arith.muli %2, %29 : vector<16x4xi32>
    %c3_i32 = arith.constant 3 : i32
    %31 = vector.broadcast %c3_i32 : i32 to vector<16x4xi32>
    %32 = arith.addi %30, %31 : vector<16x4xi32>
    %33 = arith.cmpi eq, %1, %32 : vector<16x4xi32>
    %34 = arith.extui %33 : vector<16x4xi1> to vector<16x4xi32>
    %35 = arith.sitofp %34 : vector<16x4xi32> to vector<16x4xf32>
    %cst_6 = arith.constant dense<0.000000e+00> : vector<8x4xf32>
    %36 = tpu.matmul %0, %35, %cst_6 {dimension_numbers = #tpu.dot_dimension_numbers<[1], [0], [0], [1], [0, 0, 1, 1], [], []>, precision = #tpu.contract_precision<fp32>} : vector<8x16xf32>, vector<16x4xf32>, vector<8x4xf32> -> vector<8x4xf32>
    %37 = arith.maximumf %28, %36 : vector<8x4xf32>
    %c0_7 = arith.constant 0 : index
    %c0_8 = arith.constant 0 : index
    %38 = vector.load %arg2[%c0_7, %c0_8] : memref<8x4xf32, #tpu.memory_space<vmem>>, vector<8x4xf32>
    tpu.vector_store %arg2[%c0_7, %c0_8], %37 {strides = array<i32>} : memref<8x4xf32, #tpu.memory_space<vmem>>, vector<8x4xf32>,
    return
  }
  func.func @transform_0(%arg0: i32) -> (i32, i32) {
    %c0_i32 = arith.constant 0 : i32
    %c0_i32_0 = arith.constant 0 : i32
    return %arg0, %c0_i32 : i32, i32
  }
  func.func @transform_1(%arg0: i32) -> (i32, i32) {
    %c0_i32 = arith.constant 0 : i32
    %c0_i32_0 = arith.constant 0 : i32
    return %arg0, %c0_i32 : i32, i32
  }
}

</mosaic_0001>

<bundles_post_ra>
// kernel: tpu_custom_call.1
= control target key start
LH: loop header
LB: loop body
LE: loop exit
PB: predicated region body
PF: predicated region fallthrough
CT: control target
= control target key end

     0   :  { %6 = vsyncpa [#allocation3], 0  ;;  %s2202_s6 = smov [#allocation2]   ;;  %s2534_s0 = inlined_call_operand.hbm [shape: f32[8,16], index: 0, kind: input, shape index: {}]   ;;  %s2535_s1 = inlined_call_operand.vmem [shape: f32[8,4], index: 1, kind: output, shape index: {}]  }
   0x1   :  { %s13_s7 = sshll.u32 %s2202_s6, 4  ;;  %s14_s7 = int_to_ptr.vmem [resolvable:$true] %s13_s7 }
   0x2   :  { %s2188_s8 = scalar_lea.vmem %s14_s7, 128  ;;  %p2193_p1 = scmp.lt.s32.totalorder %s14_s7, %s14_s7 }
   0x3   :  { %p2189_p0 = scmp.ne.s32.totalorder %s14_s7, %s2188_s8  ;;  %p2194_p2 = scmp.lt.s32.totalorder %s2188_s8, %s2188_s8 }
   0x5   :  { %p2195_p3 = por %p2194_p2, %p2193_p1 }
   0x7   :  { %p2196_p4 = pnand %p2195_p3, %p2189_p0 }
   0x9   :  { %2199 = shalt.err (!%p2196_p4)
}
   0xa   :  { %16 = dma.hbm_to_vmem [thread:$0]  %s2534_s0, 128, %s14_s7, [#allocation3]  }
   0xb   :  { %2200 = dma.done.wait [#allocation3], 128  }
   0xc   :  { %2201 = vsyncadd [#allocation3], 4294967168  ;;  %v21_v0 = vlaneseq  ;;  %v2203_v1 = vmov 0.0   ;;  %vm2204_vm0 = vmmov 0   ;;  %vm33_vm1 = vcmask 130048   ;;  %v20_v6 = vld [vmem:[#allocation2] sm:$0xff] }
   0xd   :  { %2008 = vmatprep.subr.mxu0 %v2203_v1  ;;  %2015 = vmatprep.subr.mxu1 %v2203_v1  ;;  %v2205_v7 = vmov 1.0   ;;  %v35_v11 = vsel %vm33_vm1, %v20_v6, 0  ;;  %vm1897_vm10 = vcmask 31744  }
   0xe   :  { %v2221_v2 = vshrl.u32 %v21_v0, 7  ;;  %v25_v3 = vand.u32 127, %v21_v0  ;;  %2012 = vmatprep.mubr.msk.f32.mxu0 %vm2204_vm0, %v2203_v1  ;;  %2019 = vmatprep.mubr.msk.f32.mxu1 %vm2204_vm0, %v2203_v1  ;;  %v2252_v14 = vand.u32 4294901760, %v35_v11 }
  0x10   :  { %v2228_v4 = vadd.s32 8, %v2221_v2  ;;  %v2230_v5 = vmul.u32 4, %v25_v3  ;;  %v2260_v17 = vsub.f32 %v35_v11, %v2252_v14 }
  0x12   :  { %vm28_vm2 = vcmp.eq.s32.totalorder %v2228_v4, %v2230_v5  ;;  %vm27_vm3 = vcmp.eq.s32.totalorder %v2221_v2, %v2230_v5  ;;  %v2249_v10 = vadd.s32 1, %v2230_v5  ;;  %v2265_v20 = vand.u32 4294901760, %v2260_v17 }
  0x13   :  { %2009 = vmatpush3.msk.msra.mxu0 %vm28_vm2, %v2205_v7  ;;  %v1905_v8 = vsel %vm28_vm2, 1.0, %v2203_v1  ;;  %v1904_v9 = vsel %vm27_vm3, 1.0, %v2203_v1  ;;  %v2310_v32 = vadd.s32 2, %v2230_v5  ;;  %v2389_v43 = vadd.s32 3, %v2230_v5 }
  0x14   :  { %2010 = vmatprep.subr.mxu0 %v2203_v1  ;;  %v144_v12 = vsub.f32 %v1905_v8, %v1905_v8  ;;  %v151_v13 = vsub.f32 %v1904_v9, %v1904_v9  ;;  %vm498_vm4 = vcmp.eq.s32.totalorder %v2228_v4, %v2249_v10  ;;  %vm497_vm5 = vcmp.eq.s32.totalorder %v2221_v2, %v2249_v10 }
  0x15   :  { %2011 = vmatpush3.msk.msra.mxu0 %vm27_vm3, %v2205_v7  ;;  %v1913_v23 = vsel %vm498_vm4, 1.0, %v2203_v1  ;;  %v107_v24 = vsub.f32 %v2260_v17, %v2265_v20  ;;  %v1912_v25 = vsel %vm497_vm5, 1.0, %v2203_v1  ;;  %vm965_vm6 = vcmp.eq.s32.totalorder %v2228_v4, %v2310_v32 }
  0x16   :  { %v145_v15 = vand.u32 4294901760, %v144_v12  ;;  %v152_v16 = vand.u32 4294901760, %v151_v13  ;;  %2022 = vmatprep.subr.mxu0 %v2203_v1  ;;  %v2282_v27 = vsub.f32 %v1913_v23, %v1913_v23  ;;  %v2286_v28 = vsub.f32 %v1912_v25, %v1912_v25 }
  0x17   :  { %v2280_v26 = vand.u32 4294901760, %v107_v24  ;;  %vm964_vm7 = vcmp.eq.s32.totalorder %v2221_v2, %v2310_v32  ;;  %v1921_v36 = vsel %vm965_vm6, 1.0, %v2203_v1  ;;  %vm1432_vm8 = vcmp.eq.s32.totalorder %v2228_v4, %v2389_v43 }
  0x18   :  { %v146_v18 = vsub.f32 %v144_v12, %v145_v15  ;;  %v153_v19 = vsub.f32 %v151_v13, %v152_v16  ;;  %v611_v29 = vand.u32 4294901760, %v2282_v27  ;;  %v618_v30 = vand.u32 4294901760, %v2286_v28 }
  0x19   :  { %2013 = vmatmul.mubr.f32.vlgmr.msra.gmra.mxu0 %v2280_v26  ;;  %v1920_v37 = vsel %vm964_vm7, 1.0, %v2203_v1  ;;  %v2356_v38 = vsub.f32 %v1921_v36, %v1921_v36  ;;  %vm1431_vm9 = vcmp.eq.s32.totalorder %v2221_v2, %v2389_v43  ;;  %v1929_v47 = vsel %vm1432_vm8, 1.0, %v2203_v1 }
  0x1a   :  { %v147_v21 = vand.u32 4294901760, %v146_v18  ;;  %v154_v22 = vand.u32 4294901760, %v153_v19  ;;  %2023 = vmatpush3.msra.mxu0 %v144_v12  ;;  %2026 = vmatprep.mubr.msk.f32.mxu0 %vm2204_vm0, %v2203_v1  ;;  %v612_v31 = vsub.f32 %v2282_v27, %v611_v29  ;;  %v619_v33 = vsub.f32 %v2286_v28, %v618_v30 }
  0x1b   :  { %2024 = vmatprep.subr.mxu0 %v2203_v1  ;;  %v2363_v39 = vsub.f32 %v1920_v37, %v1920_v37  ;;  %v1078_v40 = vand.u32 4294901760, %v2356_v38  ;;  %v1928_v48 = vsel %vm1431_vm9, 1.0, %v2203_v1  ;;  %v1544_v49 = vsub.f32 %v1929_v47, %v1929_v47 }
  0x1c   :  { %2016 = vmatpush3.msra.mxu1 %v147_v21  ;;  %2025 = vmatpush3.msra.mxu0 %v151_v13  ;;  %v613_v34 = vand.u32 4294901760, %v612_v31  ;;  %v620_v35 = vand.u32 4294901760, %v619_v33  ;;  %v1551_v50 = vsub.f32 %v1928_v48, %v1928_v48 }
  0x1d   :  { %2017 = vmatprep.subr.mxu1 %v2203_v1  ;;  %2036 = vmatprep.subr.mxu0 %v2203_v1  ;;  %v1085_v41 = vand.u32 4294901760, %v2363_v39  ;;  %v1079_v42 = vsub.f32 %v2356_v38, %v1078_v40  ;;  %v1545_v51 = vand.u32 4294901760, %v1544_v49 }
  0x1e   :  { %2018 = vmatpush3.msra.mxu1 %v154_v22  ;;  %2027 = vmatmul.mubr.f32.vlgmr.msra.gmra.mxu0 %v2260_v17  ;;  %v1552_v52 = vand.u32 4294901760, %v1551_v50 }
  0x1f   :  { %2020 = vmatmul.mubr.f32.vlgmr.msra.gmra.mxu1 %v2252_v14  ;;  %2029 = vmatprep.subr.mxu1 %v2203_v1  ;;  %v1086_v44 = vsub.f32 %v2363_v39, %v1085_v41  ;;  %v1080_v45 = vand.u32 4294901760, %v1079_v42  ;;  %v1546_v53 = vsub.f32 %v1544_v49, %v1545_v51 }
  0x20   :  { %2030 = vmatpush3.msk.msra.mxu1 %vm28_vm2, %v2205_v7  ;;  %2033 = vmatprep.mubr.msk.f32.mxu1 %vm2204_vm0, %v2203_v1  ;;  %v1553_v54 = vsub.f32 %v1551_v50, %v1552_v52 }
  0x21   :  { %2031 = vmatprep.subr.mxu1 %v2203_v1  ;;  %2037 = vmatpush3.msra.mxu0 %v145_v15  ;;  %v1087_v46 = vand.u32 4294901760, %v1086_v44  ;;  %v1547_v55 = vand.u32 4294901760, %v1546_v53 }
  0x22   :  { %2032 = vmatpush3.msk.msra.mxu1 %vm27_vm3, %v2205_v7  ;;  %2038 = vmatprep.subr.mxu0 %v2203_v1  ;;  %v1554_v56 = vand.u32 4294901760, %v1553_v54 }
  0x23   :  { %2034 = vmatmul.mubr.f32.vlgmr.msra.gmra.mxu1 %v2265_v20  ;;  %2043 = vmatprep.subr.mxu1 %v2203_v1 }
  0x24   :  { %2044 = vmatpush3.msk.msra.mxu1 %vm28_vm2, %v2205_v7  ;;  %2039 = vmatpush3.msra.mxu0 %v152_v16 }
  0x25   :  { %2045 = vmatprep.subr.mxu1 %v2203_v1  ;;  %2040 = vmatprep.mubr.msk.f32.mxu0 %vm2204_vm0, %v2203_v1 }
  0x26   :  { %2046 = vmatpush3.msk.msra.mxu1 %vm27_vm3, %v2205_v7  ;;  %2047 = vmatprep.mubr.msk.f32.mxu1 %vm2204_vm0, %v2203_v1 }
  0x27   :  { %2050 = vmatprep.subr.mxu0 %v2203_v1  ;;  %2041 = vmatmul.mubr.f32.vlgmr.msra.gmra.mxu0 %v2252_v14 }
  0x28   :  { %2048 = vmatmul.mubr.f32.vlgmr.msra.gmra.mxu1 %v2252_v14  ;;  %2051 = vmatpush3.msk.msra.mxu0 %vm498_vm4, %v2205_v7 }
  0x29   :  { %2057 = vmatprep.subr.mxu1 %v2203_v1  ;;  %2052 = vmatprep.subr.mxu0 %v2203_v1 }
  0x2a   :  { %2058 = vmatpush3.msra.mxu1 %v613_v34  ;;  %2053 = vmatpush3.msk.msra.mxu0 %vm497_vm5, %v2205_v7 }
  0x2b   :  { %2059 = vmatprep.subr.mxu1 %v2203_v1  ;;  %2054 = vmatprep.mubr.msk.f32.mxu0 %vm2204_vm0, %v2203_v1 }
  0x2c   :  { %2060 = vmatpush3.msra.mxu1 %v620_v35  ;;  %2061 = vmatprep.mubr.msk.f32.mxu1 %vm2204_vm0, %v2203_v1 }
  0x2d   :  { %2064 = vmatprep.subr.mxu0 %v2203_v1  ;;  %2055 = vmatmul.mubr.f32.vlgmr.msra.gmra.mxu0 %v2280_v26 }
  0x2e   :  { %2062 = vmatmul.mubr.f32.vlgmr.msra.gmra.mxu1 %v2252_v14  ;;  %2065 = vmatpush3.msra.mxu0 %v2282_v27 }
  0x2f   :  { %2071 = vmatprep.subr.mxu1 %v2203_v1  ;;  %2066 = vmatprep.subr.mxu0 %v2203_v1 }
  0x30   :  { %2072 = vmatpush3.msk.msra.mxu1 %vm498_vm4, %v2205_v7  ;;  %2067 = vmatpush3.msra.mxu0 %v2286_v28 }
  0x31   :  { %2073 = vmatprep.subr.mxu1 %v2203_v1  ;;  %2068 = vmatprep.mubr.msk.f32.mxu0 %vm2204_vm0, %v2203_v1 }
  0x32   :  { %2074 = vmatpush3.msk.msra.mxu1 %vm497_vm5, %v2205_v7  ;;  %2075 = vmatprep.mubr.msk.f32.mxu1 %vm2204_vm0, %v2203_v1 }
  0x33   :  { %2078 = vmatprep.subr.mxu0 %v2203_v1  ;;  %2069 = vmatmul.mubr.f32.vlgmr.msra.gmra.mxu0 %v2260_v17 }
  0x34   :  { %2076 = vmatmul.mubr.f32.vlgmr.msra.gmra.mxu1 %v2265_v20  ;;  %2079 = vmatpush3.msra.mxu0 %v611_v29 }
  0x35   :  { %2085 = vmatprep.subr.mxu1 %v2203_v1  ;;  %2080 = vmatprep.subr.mxu0 %v2203_v1 }
  0x36   :  { %2086 = vmatpush3.msk.msra.mxu1 %vm498_vm4, %v2205_v7  ;;  %2081 = vmatpush3.msra.mxu0 %v618_v30 }
  0x37   :  { %2087 = vmatprep.subr.mxu1 %v2203_v1  ;;  %2082 = vmatprep.mubr.msk.f32.mxu0 %vm2204_vm0, %v2203_v1 }
  0x38   :  { %2088 = vmatpush3.msk.msra.mxu1 %vm497_vm5, %v2205_v7  ;;  %2089 = vmatprep.mubr.msk.f32.mxu1 %vm2204_vm0, %v2203_v1 }
  0x39   :  { %2092 = vmatprep.subr.mxu0 %v2203_v1  ;;  %2083 = vmatmul.mubr.f32.vlgmr.msra.gmra.mxu0 %v2252_v14 }
  0x3a   :  { %2090 = vmatmul.mubr.f32.vlgmr.msra.gmra.mxu1 %v2252_v14  ;;  %2093 = vmatpush3.msk.msra.mxu0 %vm965_vm6, %v2205_v7 }
  0x3b   :  { %2099 = vmatprep.subr.mxu1 %v2203_v1  ;;  %2094 = vmatprep.subr.mxu0 %v2203_v1 }
  0x3c   :  { %2100 = vmatpush3.msra.mxu1 %v1080_v45  ;;  %2095 = vmatpush3.msk.msra.mxu0 %vm964_vm7, %v2205_v7 }
  0x3d   :  { %2101 = vmatprep.subr.mxu1 %v2203_v1  ;;  %2096 = vmatprep.mubr.msk.f32.mxu0 %vm2204_vm0, %v2203_v1 }
  0x3e   :  { %2102 = vmatpush3.msra.mxu1 %v1087_v46  ;;  %2103 = vmatprep.mubr.msk.f32.mxu1 %vm2204_vm0, %v2203_v1 }
  0x3f   :  { %2106 = vmatprep.subr.mxu0 %v2203_v1  ;;  %2097 = vmatmul.mubr.f32.vlgmr.msra.gmra.mxu0 %v2280_v26 }
  0x40   :  { %2104 = vmatmul.mubr.f32.vlgmr.msra.gmra.mxu1 %v2252_v14  ;;  %2107 = vmatpush3.msra.mxu0 %v2356_v38 }
  0x41   :  { %2113 = vmatprep.subr.mxu1 %v2203_v1  ;;  %2108 = vmatprep.subr.mxu0 %v2203_v1 }
  0x42   :  { %2114 = vmatpush3.msk.msra.mxu1 %vm965_vm6, %v2205_v7  ;;  %2109 = vmatpush3.msra.mxu0 %v2363_v39 }
  0x43   :  { %2115 = vmatprep.subr.mxu1 %v2203_v1  ;;  %2110 = vmatprep.mubr.msk.f32.mxu0 %vm2204_vm0, %v2203_v1 }
  0x44   :  { %2116 = vmatpush3.msk.msra.mxu1 %vm964_vm7, %v2205_v7  ;;  %2117 = vmatprep.mubr.msk.f32.mxu1 %vm2204_vm0, %v2203_v1 }
  0x45   :  { %2120 = vmatprep.subr.mxu0 %v2203_v1  ;;  %2111 = vmatmul.mubr.f32.vlgmr.msra.gmra.mxu0 %v2260_v17 }
  0x46   :  { %2118 = vmatmul.mubr.f32.vlgmr.msra.gmra.mxu1 %v2265_v20  ;;  %2121 = vmatpush3.msra.mxu0 %v1078_v40 }
  0x47   :  { %2127 = vmatprep.subr.mxu1 %v2203_v1  ;;  %2122 = vmatprep.subr.mxu0 %v2203_v1 }
  0x48   :  { %2128 = vmatpush3.msk.msra.mxu1 %vm965_vm6, %v2205_v7  ;;  %2123 = vmatpush3.msra.mxu0 %v1085_v41 }
  0x49   :  { %2129 = vmatprep.subr.mxu1 %v2203_v1  ;;  %2124 = vmatprep.mubr.msk.f32.mxu0 %vm2204_vm0, %v2203_v1 }
  0x4a   :  { %2130 = vmatpush3.msk.msra.mxu1 %vm964_vm7, %v2205_v7  ;;  %2131 = vmatprep.mubr.msk.f32.mxu1 %vm2204_vm0, %v2203_v1 }
  0x4b   :  { %2134 = vmatprep.subr.mxu0 %v2203_v1  ;;  %2125 = vmatmul.mubr.f32.vlgmr.msra.gmra.mxu0 %v2252_v14 }
  0x4c   :  { %2132 = vmatmul.mubr.f32.vlgmr.msra.gmra.mxu1 %v2252_v14  ;;  %2135 = vmatpush3.msk.msra.mxu0 %vm1432_vm8, %v2205_v7 }
  0x4d   :  { %2141 = vmatprep.subr.mxu1 %v2203_v1  ;;  %2136 = vmatprep.subr.mxu0 %v2203_v1 }
  0x4e   :  { %2142 = vmatpush3.msra.mxu1 %v1547_v55  ;;  %2137 = vmatpush3.msk.msra.mxu0 %vm1431_vm9, %v2205_v7 }
  0x4f   :  { %2143 = vmatprep.subr.mxu1 %v2203_v1  ;;  %2138 = vmatprep.mubr.msk.f32.mxu0 %vm2204_vm0, %v2203_v1 }
  0x50   :  { %2144 = vmatpush3.msra.mxu1 %v1554_v56  ;;  %2145 = vmatprep.mubr.msk.f32.mxu1 %vm2204_vm0, %v2203_v1 }
  0x51   :  { %2148 = vmatprep.subr.mxu0 %v2203_v1  ;;  %2139 = vmatmul.mubr.f32.vlgmr.msra.gmra.mxu0 %v2280_v26 }
  0x52   :  { %2146 = vmatmul.mubr.f32.vlgmr.msra.gmra.mxu1 %v2252_v14  ;;  %2149 = vmatpush3.msra.mxu0 %v1544_v49 }
  0x53   :  { %2155 = vmatprep.subr.mxu1 %v2203_v1  ;;  %2150 = vmatprep.subr.mxu0 %v2203_v1 }
  0x54   :  { %2156 = vmatpush3.msk.msra.mxu1 %vm1432_vm8, %v2205_v7  ;;  %2151 = vmatpush3.msra.mxu0 %v1551_v50 }
  0x55   :  { %2157 = vmatprep.subr.mxu1 %v2203_v1  ;;  %2152 = vmatprep.mubr.msk.f32.mxu0 %vm2204_vm0, %v2203_v1 }
  0x56   :  { %2158 = vmatpush3.msk.msra.mxu1 %vm1431_vm9, %v2205_v7  ;;  %2159 = vmatprep.mubr.msk.f32.mxu1 %vm2204_vm0, %v2203_v1 }
  0x57   :  { %2162 = vmatprep.subr.mxu0 %v2203_v1  ;;  %2153 = vmatmul.mubr.f32.vlgmr.msra.gmra.mxu0 %v2260_v17 }
  0x58   :  { %2160 = vmatmul.mubr.f32.vlgmr.msra.gmra.mxu1 %v2265_v20  ;;  %2163 = vmatpush3.msra.mxu0 %v1545_v51 }
  0x59   :  { %2169 = vmatprep.subr.mxu1 %v2203_v1  ;;  %2164 = vmatprep.subr.mxu0 %v2203_v1 }
  0x5a   :  { %2170 = vmatpush3.msk.msra.mxu1 %vm1432_vm8, %v2205_v7  ;;  %2165 = vmatpush3.msra.mxu0 %v1552_v52 }
  0x5b   :  { %2171 = vmatprep.subr.mxu1 %v2203_v1  ;;  %2166 = vmatprep.mubr.msk.f32.mxu0 %vm2204_vm0, %v2203_v1 }
  0x5c   :  { %2172 = vmatpush3.msk.msra.mxu1 %vm1431_vm9, %v2205_v7  ;;  %2173 = vmatprep.mubr.msk.f32.mxu1 %vm2204_vm0, %v2203_v1 }
  0x5d   :  { %2167 = vmatmul.mubr.f32.vlgmr.msra.gmra.mxu0 %v2252_v14  ;;  %2174 = vmatmul.mubr.f32.vlgmr.msra.gmra.mxu1 %v2252_v14 }
  0xd9   :  { %v110_v57 = vpop.f32.mrf.mxu0 }
  0xdb   :  { %v2014_v59 = vpop.f32.mrf.mxu0 }
  0xde   :  { %v267_v61 = vpop.f32.mrf.mxu0 }
  0xdf   :  { %v191_v58 = vpop.f32.mrf.mxu1 }
  0xe0   :  { %v2028_v63 = vpop.f32.mrf.mxu0  ;;  %v192_v28 = vadd.f32 %v191_v58, %v110_v57 }
  0xe1   :  { %v2021_v60 = vpop.f32.mrf.mxu1 }
  0xe2   :  { %v268_v33 = vadd.f32 %v267_v61, %v192_v28 }
  0xe3   :  { %v342_v62 = vpop.f32.mrf.mxu1 }
  0xe4   :  { %v343_v38 = vadd.f32 %v342_v62, %v268_v33 }
  0xe5   :  { %v2035_v0 = vpop.f32.mrf.mxu1 }
  0xe7   :  { %v419_v3 = vpop.f32.mrf.mxu0 }
  0xe8   :  { %v492_v4 = vpop.f32.mrf.mxu1  ;;  %v420_v44 = vadd.f32 %v419_v3, %v343_v38 }
  0xe9   :  { %v2042_v5 = vpop.f32.mrf.mxu0 }
  0xea   :  { %v2049_v2 = vpop.f32.mrf.mxu1  ;;  %v493_v53 = vadd.f32 %v492_v4, %v420_v44 }
  0xed   :  { %v576_v6 = vpop.f32.mrf.mxu0 }
  0xee   :  { %v657_v7 = vpop.f32.mrf.mxu1 }
  0xef   :  { %v2056_v8 = vpop.f32.mrf.mxu0  ;;  %v658_v25 = vadd.f32 %v657_v7, %v576_v6 }
  0xf0   :  { %v2063_v1 = vpop.f32.mrf.mxu1 }
  0xf3   :  { %v733_v9 = vpop.f32.mrf.mxu0 }
  0xf4   :  { %v808_v10 = vpop.f32.mrf.mxu1  ;;  %v734_v29 = vadd.f32 %v733_v9, %v658_v25 }
  0xf5   :  { %v2070_v11 = vpop.f32.mrf.mxu0 }
  0xf6   :  { %v2077_v12 = vpop.f32.mrf.mxu1  ;;  %v809_v35 = vadd.f32 %v808_v10, %v734_v29 }
  0xf9   :  { %v885_v13 = vpop.f32.mrf.mxu0 }
  0xfa   :  { %v958_v14 = vpop.f32.mrf.mxu1  ;;  %v886_v42 = vadd.f32 %v885_v13, %v809_v35 }
  0xfb   :  { %v2084_v15 = vpop.f32.mrf.mxu0 }
  0xfc   :  { %v2091_v16 = vpop.f32.mrf.mxu1  ;;  %v959_v49 = vadd.f32 %v958_v14, %v886_v42 }
  0xfe   :  { %v962_v56 = vmax.f32 %v493_v53, %v959_v49 }
  0xff   :  { %v1043_v17 = vpop.f32.mrf.mxu0 }
 0x100   :  { %v1124_v18 = vpop.f32.mrf.mxu1 }
 0x101   :  { %v2098_v19 = vpop.f32.mrf.mxu0  ;;  %v1125_v30 = vadd.f32 %v1124_v18, %v1043_v17 }
 0x102   :  { %v2105_v20 = vpop.f32.mrf.mxu1 }
 0x105   :  { %v1200_v21 = vpop.f32.mrf.mxu0 }
 0x106   :  { %v1275_v22 = vpop.f32.mrf.mxu1  ;;  %v1201_v34 = vadd.f32 %v1200_v21, %v1125_v30 }
 0x107   :  { %v2112_v23 = vpop.f32.mrf.mxu0 }
 0x108   :  { %v2119_v24 = vpop.f32.mrf.mxu1  ;;  %v1276_v39 = vadd.f32 %v1275_v22, %v1201_v34 }
 0x10b   :  { %v1352_v26 = vpop.f32.mrf.mxu0 }
 0x10c   :  { %v1425_v27 = vpop.f32.mrf.mxu1  ;;  %v1353_v45 = vadd.f32 %v1352_v26, %v1276_v39 }
 0x10d   :  { %v2126_v31 = vpop.f32.mrf.mxu0 }
 0x10e   :  { %v2133_v32 = vpop.f32.mrf.mxu1  ;;  %v1426_v54 = vadd.f32 %v1425_v27, %v1353_v45 }
 0x110   :  { %v1429_v60 = vmax.f32 %v962_v56, %v1426_v54 }
 0x111   :  { %v1510_v36 = vpop.f32.mrf.mxu0 }
 0x112   :  { %v1591_v37 = vpop.f32.mrf.mxu1 }
 0x113   :  { %v2140_v40 = vpop.f32.mrf.mxu0  ;;  %v1592_v43 = vadd.f32 %v1591_v37, %v1510_v36 }
 0x114   :  { %v2147_v41 = vpop.f32.mrf.mxu1 }
 0x117   :  { %v1667_v46 = vpop.f32.mrf.mxu0 }
 0x118   :  { %v1742_v47 = vpop.f32.mrf.mxu1  ;;  %v1668_v48 = vadd.f32 %v1667_v46, %v1592_v43 }
 0x119   :  { %v2154_v50 = vpop.f32.mrf.mxu0 }
 0x11a   :  { %v2161_v51 = vpop.f32.mrf.mxu1  ;;  %v1743_v52 = vadd.f32 %v1742_v47, %v1668_v48 }
 0x11d   :  { %v1819_v55 = vpop.f32.mrf.mxu0  ;;  %v1892_v58 = vpop.f32.mrf.mxu1 }
 0x11e   :  { %v1820_v57 = vadd.f32 %v1819_v55, %v1743_v52 }
 0x11f   :  { %v2168_v59 = vpop.f32.mrf.mxu0  ;;  %v2175_v62 = vpop.f32.mrf.mxu1 }
 0x120   :  { %v1893_v61 = vadd.f32 %v1892_v58, %v1820_v57 }
 0x122   :  { %v1896_v63 = vmax.f32 %v1429_v60, %v1893_v61 }
 0x124   :  { %1898 = vst.msk [vmem:[%s2535_s1] sm:$0xff] %vm1897_vm10, %v1896_v63 }
 0x125   :  { %1903 = vsyncpa [#allocation3], 1 }

</bundles_post_ra>
